<compile_context>
chip_gen: v6e
topology: v6e:2x2x1
jax: 0.10.0
libtpu: 0.0.40
codegen_flags: <defaults>
</compile_context>

<pallas_src>
import jax
import jax.numpy as jnp
from jax.experimental import pallas as pl
from jax.experimental.pallas import tpu as pltpu


def _se_kernel(x_ref, w1t_ref, w2t_ref, b2_ref, o_ref):
    # x_ref / o_ref : (Nb, C, HW)   channels-first, lane axis = HW
    # w1t_ref       : (C, Cr)       squeeze weight, pre-transposed
    # w2t_ref       : (Cr, C)       excite weight, pre-transposed
    # b2_ref        : (1, C)        excite bias row
    inv_hw = jnp.float32(1.0 / x_ref.shape[2])

    # Squeeze: AdaptiveAvgPool2d((1,1)) -> per-(batch, channel) mean, f32 accumulation.
    pooled = jnp.sum(x_ref[...], axis=2, dtype=jnp.float32) * inv_hw          # (Nb, C) f32

    # Excite: Linear(C->Cr, bias=False) + SiLU, Linear(Cr->C, bias) + Sigmoid.
    # Matmuls in the weights' native dtype (bf16 stays bf16 on the MXU), f32 accumulate.
    h = jnp.dot(pooled.astype(w1t_ref.dtype), w1t_ref[...],
                preferred_element_type=jnp.float32)                            # (Nb, Cr)
    h = h * jax.nn.sigmoid(h)                                                  # SiLU, f32
    z = jnp.dot(h.astype(w2t_ref.dtype), w2t_ref[...],
                preferred_element_type=jnp.float32)                            # (Nb, C)
    z = jax.nn.sigmoid(z + b2_ref[...].astype(jnp.float32))                    # f32 gate

    # Scale: re-read x in its native dtype; multiply by the f32 gate (single final
    # rounding to the output dtype), broadcast z across the HW lane axis.
    o_ref[...] = (x_ref[...] * z[:, :, None]).astype(o_ref.dtype)


def _vmem_capacity_bytes():
    try:
        info = pltpu.get_tpu_info()
        cap = getattr(info, "vmem_capacity_bytes", None)
        if cap:
            return int(cap)
    except Exception:
        pass
    return 64 << 20  # conservative fallback: v7x per-TensorCore VMEM


def _pick_batch_block(n, max_nb, per_elem_bytes, budget_bytes):
    """Largest divisor Nb of n, Nb <= max_nb, whose double-buffered in+out blocks fit."""
    best = 1
    for nb in range(1, max(1, max_nb) + 1):
        if n % nb == 0 and 4 * nb * per_elem_bytes <= budget_bytes:
            best = nb
    return best


def se_net_forward(x, w1, w2, b2):
    """SE block forward.  x: (N, C, H, W) NCHW.  w1: (C//r, C), w2: (C, C//r), b2: (C,)."""
    N, C, H, W = x.shape
    HW = H * W
    Cr = w1.shape[0]
    itemsize = jnp.dtype(x.dtype).itemsize

    # Channels-first layout only: reshape is free (no HBM traffic), unlike the old
    # NCHW<->NHWC transposes which were full extra read+write passes of x.
    x_flat = x.reshape(N, C, HW)
    w1t = w1.T                      # (C, Cr)
    w2t = w2.T                      # (Cr, C)
    b2_row = b2.reshape(1, C)       # (1, C)

    weight_bytes = int((w1t.size + w2t.size + b2_row.size) * jnp.dtype(w1t.dtype).itemsize)

    # Per-generation VMEM budget for the double-buffered in+out blocks (4x block size).
    vmem_cap = _vmem_capacity_bytes()
    headroom = 8 << 20
    if vmem_cap <= (64 << 20):
        block_budget = 22 << 20        # v7x-class: 64 MiB per TC, stay well clear
    else:
        block_budget = 80 << 20        # v5e/v6e-class: 128 MiB, allow big early-stage slabs
    block_budget = min(block_budget, vmem_cap - headroom - 2 * weight_bytes)

    per_elem_bytes = C * HW * itemsize
    if 4 * per_elem_bytes > block_budget:
        # TODO(synk): implement the two-pass HW-tiled path instead of raising.
        raise ValueError(
            f"SE_Net single-pass kernel: one batch element's slab ({per_elem_bytes} B, "
            f"double-buffered in+out = {4 * per_elem_bytes} B) exceeds the VMEM block "
            f"budget ({block_budget} B) on this TPU generation; HW-tiled two-pass path "
            f"is not implemented.")

    # Cap Nb at N//2 so the parallel grid has >=2 steps (both v7x TensorCores used).
    max_nb = max(1, N // 2)
    Nb = _pick_batch_block(N, max_nb, per_elem_bytes, block_budget)
    grid = (N // Nb,)
    block_shape = (Nb, C, HW)

    vmem_limit = 4 * Nb * per_elem_bytes + 2 * weight_bytes + (4 << 20)
    vmem_limit = int(min(max(vmem_limit, 16 << 20), vmem_cap - headroom))

    cost = pl.CostEstimate(
        flops=2 * N * C * HW + 4 * N * C * Cr,
        transcendentals=N * (C + 2 * Cr),
        bytes_accessed=2 * N * C * HW * itemsize + 2 * weight_bytes,
    )

    out = pl.pallas_call(
        _se_kernel,
        out_shape=jax.ShapeDtypeStruct(x_flat.shape, x.dtype),
        grid_spec=pltpu.PrefetchScalarGridSpec(
            num_scalar_prefetch=0,
            grid=grid,
            in_specs=[
                pl.BlockSpec(block_shape, lambda n: (n, 0, 0)),   # x slab (Nb per step)
                pl.BlockSpec((C, Cr), lambda n: (0, 0)),          # W1^T (resident)
                pl.BlockSpec((Cr, C), lambda n: (0, 0)),          # W2^T (resident)
                pl.BlockSpec((1, C), lambda n: (0, 0)),           # b2 row (resident)
            ],
            out_specs=pl.BlockSpec(block_shape, lambda n: (n, 0, 0)),
        ),
        compiler_params=pltpu.CompilerParams(
            dimension_semantics=("parallel",),
            vmem_limit_bytes=vmem_limit,
        ),
        cost_estimate=cost,
    )(x_flat, w1t, w2t, b2_row)

    return out.reshape(N, C, H, W)


def _reference(x, w1, w2, b2):
    # Pure-JAX f32 reference mirroring the PyTorch forward.
    xf = x.astype(jnp.float32)
    pooled = jnp.mean(xf, axis=(2, 3))                           # (N, C)
    h = pooled @ w1.T.astype(jnp.float32)                        # (N, Cr)
    h = h * jax.nn.sigmoid(h)                                    # SiLU
    z = h @ w2.T.astype(jnp.float32) + b2.astype(jnp.float32)    # (N, C)
    z = jax.nn.sigmoid(z)                                        # Sigmoid
    return xf * z[:, :, None, None]


def _make_inputs(key, N, C, H, W, reduction_ratio, dtype=jnp.float32):
    Cr = C // reduction_ratio
    kx, k1, k2, kb = jax.random.split(key, 4)
    x = jax.random.normal(kx, (N, C, H, W), dtype=jnp.float32).astype(dtype)
    bound1 = 1.0 / jnp.sqrt(C)
    bound2 = 1.0 / jnp.sqrt(Cr)
    w1 = jax.random.uniform(k1, (Cr, C), minval=-bound1, maxval=bound1,
                            dtype=jnp.float32).astype(dtype)
    w2 = jax.random.uniform(k2, (C, Cr), minval=-bound2, maxval=bound2,
                            dtype=jnp.float32).astype(dtype)
    b2 = jax.random.uniform(kb, (C,), minval=-bound2, maxval=bound2,
                            dtype=jnp.float32).astype(dtype)
    return x, w1, w2, b2


if __name__ == "__main__":
    key = jax.random.PRNGKey(0)
    k_a, k_b, k_c = jax.random.split(key, 3)

    # Case 1 (the module's toy config): N=2, C=4, H=W=16, reduction_ratio=2.
    # HW=256 -> lane-dense stores; grid=(2,) so both v7x TCs get one batch element.
    x, w1, w2, b2 = _make_inputs(k_a, N=2, C=4, H=16, W=16, reduction_ratio=2)
    out = jax.block_until_ready(se_net_forward(x, w1, w2, b2))
    ref = _reference(x, w1, w2, b2)
    assert out.shape == x.shape
    assert jnp.allclose(out, ref, atol=1e-5, rtol=1e-5), "mismatch vs reference (f32, HW>=128)"

    # Case 2: wide-channel / small-spatial stage: N=2, C=128, H=W=4, r=4.
    x, w1, w2, b2 = _make_inputs(k_b, N=2, C=128, H=4, W=4, reduction_ratio=4)
    out = jax.block_until_ready(se_net_forward(x, w1, w2, b2))
    ref = _reference(x, w1, w2, b2)
    assert out.shape == x.shape
    assert jnp.allclose(out, ref, atol=1e-5, rtol=1e-5), "mismatch vs reference (f32, HW<128)"

    # Case 3: bf16 activations + weights (native-bf16 MXU path, f32 gate, single rounding).
    x, w1, w2, b2 = _make_inputs(k_c, N=4, C=32, H=8, W=8, reduction_ratio=4,
                                 dtype=jnp.bfloat16)
    out = jax.block_until_ready(se_net_forward(x, w1, w2, b2))
    ref = _reference(x, w1, w2, b2)
    assert out.shape == x.shape
    assert out.dtype == jnp.bfloat16
    assert jnp.allclose(out.astype(jnp.float32), ref, atol=5e-2, rtol=5e-2), \
        "mismatch vs reference (bf16)"

    print("KERNEL_OK")
</pallas_src>

<mosaic_0001>
module attributes {stable_mosaic.version = 11 : i64} {
  func.func @_se_kernel(%arg0: i32, %arg1: memref<1x4x256xf32, #tpu.memory_space<vmem>>, %arg2: memref<4x2xf32, #tpu.memory_space<vmem>>, %arg3: memref<2x4xf32, #tpu.memory_space<vmem>>, %arg4: memref<1x4xf32, #tpu.memory_space<vmem>>, %arg5: memref<1x4x256xf32, #tpu.memory_space<vmem>>) attributes {dimension_semantics = [#tpu.dimension_semantics<parallel>], iteration_bounds = array<i64: 2>, scalar_prefetch = 0 : i64, scratch_operands = 0 : i64, tpu.core_type = #tpu.core_type<tc>, window_params = [{transform_indices = @transform_0, window_bounds = array<i64: 1, 4, 256>}, {pipeline_mode = #tpu.pipeline_mode<synchronous>, transform_indices = @transform_1, window_bounds = array<i64: 4, 2>}, {pipeline_mode = #tpu.pipeline_mode<synchronous>, transform_indices = @transform_2, window_bounds = array<i64: 2, 4>}, {pipeline_mode = #tpu.pipeline_mode<synchronous>, transform_indices = @transform_3, window_bounds = array<i64: 1, 4>}, {transform_indices = @transform_4, window_bounds = array<i64: 1, 4, 256>}]} {
    %c0 = arith.constant 0 : index
    %c0_0 = arith.constant 0 : index
    %c0_1 = arith.constant 0 : index
    %0 = vector.load %arg1[%c0, %c0_0, %c0_1] : memref<1x4x256xf32, #tpu.memory_space<vmem>>, vector<1x4x256xf32>
    %cst = arith.constant dense<0.000000e+00> : vector<1x4xf32>
    %1 = vector.multi_reduction <add>, %0, %cst [2] : vector<1x4x256xf32> to vector<1x4xf32>
    %cst_2 = arith.constant 3.906250e-03 : f32
    %2 = vector.broadcast %cst_2 : f32 to vector<1x4xf32>
    %3 = arith.mulf %1, %2 : vector<1x4xf32>
    %c0_3 = arith.constant 0 : index
    %c0_4 = arith.constant 0 : index
    %4 = vector.load %arg2[%c0_3, %c0_4] : memref<4x2xf32, #tpu.memory_space<vmem>>, vector<4x2xf32>
    %cst_5 = arith.constant dense<0.000000e+00> : vector<1x2xf32>
    %5 = tpu.matmul %3, %4, %cst_5 {dimension_numbers = #tpu.dot_dimension_numbers<[1], [0], [0], [1], [0, 0, 1, 1], [], []>} : vector<1x4xf32>, vector<4x2xf32>, vector<1x2xf32> -> vector<1x2xf32>
    %6 = arith.negf %5 : vector<1x2xf32>
    %7 = math.exp %6 : vector<1x2xf32>
    %cst_6 = arith.constant 1.000000e+00 : f32
    %8 = vector.broadcast %cst_6 : f32 to vector<1x2xf32>
    %9 = arith.addf %8, %7 : vector<1x2xf32>
    %10 = arith.divf %8, %9 : vector<1x2xf32>
    %11 = arith.mulf %5, %10 : vector<1x2xf32>
    %c0_7 = arith.constant 0 : index
    %c0_8 = arith.constant 0 : index
    %12 = vector.load %arg3[%c0_7, %c0_8] : memref<2x4xf32, #tpu.memory_space<vmem>>, vector<2x4xf32>
    %cst_9 = arith.constant dense<0.000000e+00> : vector<1x4xf32>
    %13 = tpu.matmul %11, %12, %cst_9 {dimension_numbers = #tpu.dot_dimension_numbers<[1], [0], [0], [1], [0, 0, 1, 1], [], []>} : vector<1x2xf32>, vector<2x4xf32>, vector<1x4xf32> -> vector<1x4xf32>
    %c0_10 = arith.constant 0 : index
    %c0_11 = arith.constant 0 : index
    %14 = vector.load %arg4[%c0_10, %c0_11] : memref<1x4xf32, #tpu.memory_space<vmem>>, vector<1x4xf32>
    %15 = arith.addf %13, %14 : vector<1x4xf32>
    %16 = arith.negf %15 : vector<1x4xf32>
    %17 = math.exp %16 : vector<1x4xf32>
    %cst_12 = arith.constant 1.000000e+00 : f32
    %18 = vector.broadcast %cst_12 : f32 to vector<1x4xf32>
    %19 = arith.addf %18, %17 : vector<1x4xf32>
    %20 = arith.divf %18, %19 : vector<1x4xf32>
    %c0_13 = arith.constant 0 : index
    %c0_14 = arith.constant 0 : index
    %c0_15 = arith.constant 0 : index
    %21 = vector.load %arg1[%c0_13, %c0_14, %c0_15] : memref<1x4x256xf32, #tpu.memory_space<vmem>>, vector<1x4x256xf32>
    %22 = vector.shape_cast %20 : vector<1x4xf32> to vector<1x4x1xf32>
    %23 = vector.broadcast %22 : vector<1x4x1xf32> to vector<1x4x256xf32>
    %24 = arith.mulf %21, %23 : vector<1x4x256xf32>
    %c0_16 = arith.constant 0 : index
    %c0_17 = arith.constant 0 : index
    %c0_18 = arith.constant 0 : index
    %25 = vector.load %arg5[%c0_16, %c0_17, %c0_18] : memref<1x4x256xf32, #tpu.memory_space<vmem>>, vector<1x4x256xf32>
    tpu.vector_store %arg5[%c0_16, %c0_17, %c0_18], %24 {strides = array<i32>} : memref<1x4x256xf32, #tpu.memory_space<vmem>>, vector<1x4x256xf32>,
    return
  }
  func.func @transform_0(%arg0: i32) -> (i32, i32, i32) {
    %c0_i32 = arith.constant 0 : i32
    %c0_i32_0 = arith.constant 0 : i32
    %c0_i32_1 = arith.constant 0 : i32
    return %arg0, %c0_i32, %c0_i32_0 : i32, i32, i32
  }
  func.func @transform_1(%arg0: i32) -> (i32, i32) {
    %c0_i32 = arith.constant 0 : i32
    %c0_i32_0 = arith.constant 0 : i32
    %c0_i32_1 = arith.constant 0 : i32
    return %c0_i32, %c0_i32_0 : i32, i32
  }
  func.func @transform_2(%arg0: i32) -> (i32, i32) {
    %c0_i32 = arith.constant 0 : i32
    %c0_i32_0 = arith.constant 0 : i32
    %c0_i32_1 = arith.constant 0 : i32
    return %c0_i32, %c0_i32_0 : i32, i32
  }
  func.func @transform_3(%arg0: i32) -> (i32, i32) {
    %c0_i32 = arith.constant 0 : i32
    %c0_i32_0 = arith.constant 0 : i32
    %c0_i32_1 = arith.constant 0 : i32
    return %c0_i32, %c0_i32_0 : i32, i32
  }
  func.func @transform_4(%arg0: i32) -> (i32, i32, i32) {
    %c0_i32 = arith.constant 0 : i32
    %c0_i32_0 = arith.constant 0 : i32
    %c0_i32_1 = arith.constant 0 : i32
    return %arg0, %c0_i32, %c0_i32_0 : i32, i32, i32
  }
}

</mosaic_0001>

<bundles_post_ra>
// kernel: tpu_custom_call.1
= control target key start
LH: loop header
LB: loop body
LE: loop exit
PB: predicated region body
PF: predicated region fallthrough
CT: control target
= control target key end

     0   :  { %9 = vsyncpa [#allocation3], 0  ;;  %s877_s0 = inlined_call_operand.hbm [shape: f32[2,4,256], index: 0, kind: input, shape index: {}]   ;;  %s878_s1 = inlined_call_operand.vmem [shape: f32[4,2], index: 1, kind: input, shape index: {}]   ;;  %s879_s2 = inlined_call_operand.vmem [shape: f32[2,4], index: 2, kind: input, shape index: {}]   ;;  %s880_s3 = inlined_call_operand.vmem [shape: f32[1,4], index: 3, kind: input, shape index: {}]   ;;  %s881_s4 = inlined_call_operand.hbm [shape: f32[2,4,256], index: 4, kind: output, shape index: {}]  }
   0x1   :  { %11 = vsyncpa [#allocation3 + $0x1], 0 }
   0x2   :  { %12 = vsyncpa [#allocation4], 0 }
   0x3   :  { %14 = vsyncpa [#allocation4 + $0x1], 0  ;;  %s723_s15 = smov 0   ;;  %s725_s16 = smov 0  }
   0x4   :  { %s727_s17 = smov 0   ;;  %s729_s18 = smov 0  }
   0x5 LB: > { %s744_s19 = sadd.s32 4294967295, %s691_s18   ;;  %s505_s20 = sadd.s32 4294967294, %s691_s18   ;;  %s691_s18 = sphi %s729_s18, %s898_s18   ;;  %s687_s17 = sphi %s727_s17, %s897_s17   ;;  %s683_s16 = sphi %s725_s16, %s896_s16   ;;  %s679_s15 = sphi %s723_s15, %s895_s15  }
   0x6   : > { %s748_s21 = sadd.s32 1, %s691_s18   ;;  %s27_s22 = sadd.s32 1, %s687_s17 }
   0x7   : > { %s24_s23 = ssub.s32 %s691_s18, %s748_s21  ;;  %p34_p0 = scmp.ne.s32.totalorder %s687_s17, %s683_s16 }
   0x8   : > { %p25_p1 = scmp.eq.s32.totalorder %s24_s23, 0  ;;  %p35_p2 = scmp.eq.s32.totalorder %s691_s18, 0 }
   0x9   : > { %p40_p3 = scmp.ne.s32.totalorder %s683_s16, %s679_s15  ;;  %p41_p4 = scmp.eq.s32.totalorder %s744_s19, 0 }
   0xa   : > { %s760_s24 = scalar_select %p25_p1, %s687_s17, %s27_s22  }
   0xb   : > { %p762_p5 = por %p35_p2, %p34_p0  ;;  %p766_p6 = por %p41_p4, %p40_p3 }
   0xc   : > { %p127_p7 = scmp.eq.s32.totalorder %s744_s19, 1  ;;  %p133_p8 = scmp.eq.s32.totalorder %s505_s20, 1 }
   0xd   : > { %s885_s26 = scalar_select %p766_p6, 1, 0 }
   0xe   : > { %p553_p10 = scmp.lt.s32.totalorder %s691_s18, 2  ;;  %p773_p11 = por %p127_p7, %p34_p0 }
   0xf   : > { %p777_p12 = por %p133_p8, %p40_p3  ;;  %s162_s29 = sand.u32 1, %s687_s17  }
  0x10   : > { %s886_s27 = scalar_select %p773_p11, 1, 0 }
  0x11   : > { %s887_s28 = scalar_select %p777_p12, 1, 0 }
  0x12   : > { %s525_s30 = sshll.u32 %s691_s18, 7  ;;  %s508_s5 = sshll.u32 %s162_s29, 3 }
  0x13   : > { %s786_s8 = scalar_lea.hbm %s877_s0, %s525_s30  ;;  %s166_s9 = scalar_lea.vmem [#allocation2], %s508_s5 }
  0x14   : > { %s174_s10 = sshll.u32 %s166_s9, 4  ;;  %p790_p13 = pnand %p553_p10, %p762_p5  ;;  %s794_s10 = int_to_ptr.vmem [resolvable:$true] %s174_s10 }
  0x15   : > { %s163_s12 = scalar_lea.sflag [#allocation3], %s162_s29  ;;  %s599_s13 = scalar_lea.hbm %s786_s8, 128 }
  0x16   : > { %p600_p2 = scmp.ne.s32.totalorder %s786_s8, %s599_s13  ;;  %p601_p3 = pneg %p790_p13 }
  0x17   : > { %s604_s22 = scalar_lea.hbm %s877_s0, 256  ;;  %p605_p5 = scmp.lt.s32.totalorder %s786_s8, %s877_s0 }
  0x18   : > { %p602_p4 = pnand %p601_p3, %p600_p2  ;;  %p606_p8 = scmp.lt.s32.totalorder %s604_s22, %s599_s13 }
  0x1a   : > { %p603_p7 = pneg %p602_p4  ;;  %p607_p10 = por %p606_p8, %p605_p5 }
  0x1c   : > { %p608_p9 = pnand %p607_p10, %p603_p7 }
  0x1e   : > { %611 = shalt.err (!%p608_p9)
}
  0x1f   : > { %s612_s29 = scalar_lea.vmem %s794_s10, 128  ;;  %s693_s30 = smov [#allocation2]  }
  0x20   : > { %p613_p0 = scmp.ne.s32.totalorder %s794_s10, %s612_s29  ;;  %s617_s5 = sshll.u32 %s693_s30, 4  ;;  %s618_s5 = int_to_ptr.vmem [resolvable:$false] %s617_s5 }
  0x21   : > { %s619_s6 = scalar_lea.vmem %s618_s5, 256  ;;  %p620_p4 = scmp.lt.s32.totalorder %s794_s10, %s618_s5 }
  0x22   : > { %p615_p1 = pnand %p613_p0, %p601_p3  ;;  %p621_p12 = scmp.lt.s32.totalorder %s619_s6, %s612_s29 }
  0x24   : > { %p616_p2 = pneg %p615_p1  ;;  %p622_p11 = por %p621_p12, %p620_p4 }
  0x26   : > { %p623_p6 = pnand %p622_p11, %p616_p2 }
  0x28   : > { %626 = shalt.err (!%p623_p6)
}
  0x29   : > { %548 = dma.hbm_to_vmem [thread:$0]  (!%p790_p13), %s786_s8, 128, %s794_s10, %s163_s12  }
  0x2a   : > { %p889_p9 = scmp.lt.s32.totalorder %s691_s18, 3  ;;  %p890_p7 = scmp.ge.s32.totalorder %s691_s18, 1 }
  0x2c   : > { %p180_p0 = pnand %p890_p7, %p889_p9 }
  0x2d   : > { %s821_s7 = sand.u32 (!%p180_p0), 1, %s683_s16   ;;  %p891_p6 = scmp.ne.s32.totalorder (!%p180_p0), %s885_s26, 0 }
  0x2e   : > { %183 = sbr.rel (%p180_p0) target bundleno = 788 (0x314), region = 36  ;;  %s512_s9 = sshll.u32 (!%p180_p0), %s821_s7, 3 }
  0x2f   : > { %s186_s13 = scalar_lea.sflag (!%p180_p0), [#allocation3], %s821_s7  ;;  %s189_s11 = scalar_lea.vmem (!%p180_p0), [#allocation2], %s512_s9 }
  0x33   : > { %670 = dma.done.wait (%p891_p6), %s186_s13, 128  }
  0x34   : > { %672 = vsyncadd (%p891_p6), %s186_s13, 4294967168  ;;  %vm218_vm0 = vcmask 1043456   ;;  %v214_v0 = vld [vmem:[%s189_s11] sm:$0xff]  ;;  %v694_v5 = vmov 0.0   ;;  %vm695_vm1 = vmmov 0   ;;  %v227_v7 = vlaneseq  ;;  %s526_s22 = sshll.u32 %s744_s19, 7 }
  0x35   : > { %v216_v1 = vcombine.high %v214_v0, %v214_v0  ;;  %v219_v2 = vsel %vm218_vm0, %v214_v0, 0.0  ;;  %531 = vmatprep.subr.mxu0 %v694_v5  ;;  %v225_v6 = vld [vmem:[%s878_s1] sm:$0xf]  ;;  %536 = vmatprep.subr.mxu1 %v694_v5  ;;  %vm233_vm2 = vcmask 31744   ;;  %vm322_vm3 = vcmask 1041408   ;;  %s213_s23 = scalar_lea.vmem [#allocation5], %s512_s9  ;;  %s433_s5 = scalar_lea.hbm %s881_s4, %s526_s22 }
  0x36   : > { %532 = vmatpush3.msk.msra.mxu0 %vm218_vm0, %v225_v6  ;;  %533 = vmatprep.mubr.msk.f32.mxu0 %vm695_vm1, %v694_v5  ;;  %v228_v8 = vand.u32 127, %v227_v7  ;;  %v230_v9 = vshrl.u32 %v227_v7, 7  ;;  %v316_v14 = vld [vmem:[%s879_s2] sm:$0x3]  ;;  %vm318_vm4 = vcmask 15360   ;;  %s435_s25 = sshll.u32 %s213_s23, 4  ;;  %s436_s25 = int_to_ptr.vmem [resolvable:$true] %s435_s25 }
  0x37   : > { %v220_v3 = vsel %vm218_vm0, %v216_v1, 0.0  ;;  %538 = vmatprep.mubr.msk.f32.mxu1 %vm695_vm1, %v694_v5  ;;  %537 = vmatpush3.msk.msra.mxu1 %vm322_vm3, %v316_v14  ;;  %v317_v22 = vld [vmem:[%s880_s3] sm:$0x1]  ;;  %v696_v32 = vmov 839922192   ;;  %s421_s6 = scalar_lea.sflag [#allocation4], %s821_s7 }
  0x38   : > { %v221_v4 = vadd.f32 %v220_v3, %v219_v2  ;;  %v231_v10 = vsub.s32 %v228_v8, %v230_v9  ;;  %v404_v29 = vsub.s32 0, %v230_v9  ;;  %v411_v33 = vunpack.c.l.s4 %v696_v32  ;;  %s627_s13 = scalar_lea.vmem %s436_s25, 128  ;;  %p892_p12 = scmp.ne.s32.totalorder %s886_s27, 0 }
  0x39   : > { %p628_p11 = scmp.ne.s32.totalorder %s436_s25, %s627_s13  ;;  %s697_s11 = smov [#allocation5]  }
  0x3a   : > { %222 = vadd.xlane.f32.xlu0 %v221_v4  ;;  %v412_v34 = vunpack.c.0.s8 %v411_v33  ;;  %s631_s8 = sshll.u32 %s697_s11, 4  ;;  %s632_s8 = int_to_ptr.vmem [resolvable:$false] %s631_s8 }
  0x3b   : > { %p629_p13 = pnand %p628_p11, %p892_p12  ;;  %s633_s19 = scalar_lea.vmem %s632_s8, 256 }
  0x3c   : > { %v415_v35 = vsub.s32 %v412_v34, %v230_v9  ;;  %p634_p3 = scmp.lt.s32.totalorder %s436_s25, %s632_s8  ;;  %p635_p5 = scmp.lt.s32.totalorder %s633_s19, %s627_s13 }
  0x3d   : > { %p630_p1 = pneg %p629_p13 }
  0x3e   : > { %p636_p8 = por %p635_p5, %p634_p3 }
  0x40   : > { %p637_p10 = pnand %p636_p8, %p630_p1 }
  0xc3   : > { %v223_v11 = vpop.xlane.xlu0 %222 }
  0xc4   : > { %v224_v12 = vmul.f32 0.00390625, %v223_v11 }
  0xc6   : > { %v232_v13 = vrot.slane %v224_v12, %v231_v10 }
  0xc8   : > { %534 = vmatmul.mubr.msk.f32.vlgmr.msra.gmra.mxu0 %vm233_vm2, %v232_v13 }
 0x188   : > { %v305_v15 = vpop.f32.mrf.mxu0 }
 0x189   : > { %v516_v16 = vmul.f32 -1.442695, %v305_v15 }
 0x18a   : > { %v535_v17 = vpop.f32.mrf.mxu0 }
 0x18b   : > { %591 = vpow2.f32 %v516_v16 }
 0x198   : > { %v592_v18 = vpop.eup %591 }
 0x199   : > { %v312_v19 = vadd.f32 1.0, %v592_v18 }
 0x19b   : > { %593 = vrcp.f32 %v312_v19 }
 0x1a8   : > { %v594_v20 = vpop.eup %593 }
 0x1a9   : > { %v315_v21 = vmul.f32 %v594_v20, %v305_v15 }
 0x1ab   : > { %539 = vmatmul.mubr.msk.f32.vlgmr.msra.gmra.mxu1 %vm318_vm4, %v315_v21 }
 0x26b   : > { %v392_v23 = vpop.f32.mrf.mxu1 }
 0x26c   : > { %v393_v24 = vadd.f32 %v392_v23, %v317_v22 }
 0x26d   : > { %v540_v25 = vpop.f32.mrf.mxu1 }
 0x26e   : > { %v519_v26 = vmul.f32 -1.442695, %v393_v24 }
 0x270   : > { %595 = vpow2.f32 %v519_v26 }
 0x27d   : > { %v596_v27 = vpop.eup %595 }
 0x27e   : > { %v399_v28 = vadd.f32 1.0, %v596_v27 }
 0x280   : > { %597 = vrcp.f32 %v399_v28 }
 0x28d   : > { %v598_v30 = vpop.eup %597 }
 0x28e   : > { %v405_v31 = vrot.slane %v598_v30, %v404_v29 }
 0x290   : > { %407 = vbcast.lane.b32.xlu0 %v405_v31, 256 }
 0x302   : > { %v408_v36 = vpop.permute.xlu0 %407 }
 0x303   : > { %v416_v37 = vrot.slane %v408_v36, %v415_v35 }
 0x305   : > { %v418_v38 = vmul.f32 %v416_v37, %v214_v0 }
 0x307   : > { %419 = vst [vmem:[%s213_s23] sm:$0xff] %v418_v38 }
 0x308   : > { %640 = shalt.err (!%p637_p10)
}
 0x309   : > { %s641_s9 = scalar_lea.hbm %s433_s5, 128  ;;  %s645_s26 = scalar_lea.hbm %s881_s4, 256 }
 0x30a   : > { %p642_p2 = scmp.ne.s32.totalorder %s433_s5, %s641_s9  ;;  %p646_p7 = scmp.lt.s32.totalorder %s433_s5, %s881_s4 }
 0x30b   : > { %p647_p0 = scmp.lt.s32.totalorder %s645_s26, %s641_s9 }
 0x30c   : > { %p643_p4 = pnand %p642_p2, %p892_p12 }
 0x30d   : > { %p648_p6 = por %p647_p0, %p646_p7 }
 0x30e   : > { %p644_p9 = pneg %p643_p4 }
 0x310   : > { %p649_p11 = pnand %p648_p6, %p644_p9 }
 0x312   : > { %652 = shalt.err (!%p649_p11)
}
 0x313   : > { %543 = dma.vmem_to_hbm [thread:$0]  (%p892_p12), %s436_s25, 128, %s433_s5, %s421_s6  }
 0x314 PF: > { %s447_s20 = sand.u32 1, %s679_s15   ;;  %p893_p13 = scmp.ne.s32.totalorder %s887_s28, 0 }
 0x315   : > { %p894_p1 = scmp.ge.s32.totalorder %s691_s18, 2  ;;  %s448_s22 = scalar_lea.sflag [#allocation4], %s447_s20 }
 0x317   : > { %p550_p3 = pnand %p894_p1, %p893_p13 }
 0x319   : > { %p551_p5 = pneg %p550_p3 }
 0x31b   : > { %674 = dma.done.wait (%p551_p5), %s448_s22, 128  }
 0x31c   : > { %676 = vsyncadd (%p551_p5), %s448_s22, 4294967168  ;;  %p17_p8 = scmp.ge.s32.totalorder %s748_s21, 4   ;;  %s895_s15 = smov %s683_s16 }
 0x31d   : > { %s896_s16 = smov %s687_s17  ;;  %s897_s17 = smov %s760_s24 }
 0x31e   : > { %s898_s18 = smov %s748_s21  ;;  %19 = sbr.rel (!%p17_p8) target bundleno = 5 (0x5), region = 81 }
 0x323   :  { %453 = vsyncpa [#allocation3], 1 }
 0x324   :  { %455 = vsyncpa [#allocation3 + $0x1], 1 }
 0x325   :  { %456 = vsyncpa [#allocation4], 1 }
 0x326   :  { %458 = vsyncpa [#allocation4 + $0x1], 1 }

</bundles_post_ra>
